<compile_context>
chip_gen: v7x
topology: tpu7x:2x2x1
jax: 0.10.0
libtpu: 0.0.40
codegen_flags: <defaults>
</compile_context>

<pallas_src>
import functools

import jax
import jax.numpy as jnp
from jax.experimental import pallas as pl
from jax.experimental.pallas import tpu as pltpu


def orbital_block_kernel(params_ref, o_ref, *, n_seq, n_valid, eps):
    """params_ref: (rows, 128) f32 packed as
         rows [0, S)          : sel  (1.0 if token > 0 else 0.0; 0 in padded lanes)
         row  [S]             : delta = (tgt_emb[1]-tgt_emb[0]) @ W, tiled over batch
         rows [S+1, 2S+1)     : base  = (pos_emb + tgt_emb[0]) @ W, tiled over batch
         rows [2S+1, 3S+1)    : gamma[s] (broadcast along lanes)
         rows [3S+1, 4S+1)    : beta[s]  (broadcast along lanes)
       o_ref: (S, 128) f32.  n_valid = true B*O lane count (python float)."""
    S = n_seq

    sel = params_ref[0:S, :]                       # (S, 128)
    delta = params_ref[S:S + 1, :]                 # (1, 128)  sublane-broadcast
    base = params_ref[S + 1:2 * S + 1, :]          # (S, 128)
    gamma = params_ref[2 * S + 1:3 * S + 1, :][:, 0:1]   # (S, 1) narrow column
    beta = params_ref[3 * S + 1:4 * S + 1, :][:, 0:1]    # (S, 1) narrow column

    # Embedding lookup + Linear, fully folded: one wide VPU FMA.
    y = sel * delta + base                         # (S, 128); padded lanes stay 0

    # BatchNorm1d (training): per-channel (= s) biased stats over the true B*O lanes.
    inv_n = 1.0 / n_valid                          # trace-time constant
    s1 = jnp.sum(y, axis=1, keepdims=True)         # (S, 1) lane reduce (XLU)
    s2 = jnp.sum(y * y, axis=1, keepdims=True)     # (S, 1) lane reduce (XLU)
    mean = s1 * inv_n
    var = s2 * inv_n - mean * mean                 # biased variance (fused form)

    scale = gamma * jax.lax.rsqrt(var + eps)       # (S, 1)  EUP rsqrt, narrow ops
    offset = beta - mean * scale                   # (S, 1)
    o_ref[...] = y * scale + offset                # one broadcast FMA, dense vst
    # TODO(synk): BatchNorm running_mean/running_var buffer updates (training
    # bookkeeping, not part of the returned tensor) are not reproduced.


def orbital_block(x_tokens, tgt_emb, pos_emb_s, w_do, gamma, beta, *, eps=1e-5):
    B, S = x_tokens.shape
    V, D = tgt_emb.shape
    O = w_do.shape[1]
    # PyTorch BatchNorm1d(num_out) applied to the 3-D (B, S, O) tensor uses dim 1
    # (= S) as the channel axis; the module is only well-defined when S == O.
    assert S == O, "OrbitalBlock with use_embedding+batch_norm requires num_in == num_out"
    assert V == 2, "2-way select assumes tgt_vocab_size == 2 (module default)"
    BO = B * O
    LANES = 128
    n_lanes = ((BO + LANES - 1) // LANES) * LANES  # lane-dense (multiple of 128)

    # ---- trace-time algebraic fold of the bias-free Linear into the embeddings ----
    #   y = (tgt_emb[x] + pos_emb[s]) @ W == sel * ((e1-e0)@W) + (pos_emb@W + e0@W)
    emb_w = jnp.dot(tgt_emb, w_do)                           # (2, O)
    pos_w = jnp.dot(pos_emb_s, w_do)                         # (S, O)
    delta = emb_w[1] - emb_w[0]                              # (O,)
    base = pos_w + emb_w[0][None, :]                         # (S, O)

    # ---- pack everything into ONE lane-dense (rows, 128) f32 buffer (single DMA) ---
    # lane index = b*O + o for lanes < B*O; zero padding beyond (keeps stats exact).
    sel_f = (x_tokens > 0).astype(jnp.float32)               # (B, S)  {0,1}
    sel_rep = jnp.repeat(sel_f.T, O, axis=1)                 # (S, BO)
    delta_t = jnp.tile(delta, B)[None, :]                    # (1, BO)
    base_t = jnp.tile(base, (1, B))                          # (S, BO)

    def pad_lanes(a):
        return jnp.pad(a, ((0, 0), (0, n_lanes - a.shape[1])))

    gamma_r = jnp.broadcast_to(gamma.reshape(S, 1), (S, n_lanes))
    beta_r = jnp.broadcast_to(beta.reshape(S, 1), (S, n_lanes))
    packed = jnp.concatenate(
        [pad_lanes(sel_rep), pad_lanes(delta_t), pad_lanes(base_t), gamma_r, beta_r],
        axis=0).astype(jnp.float32)                          # (4S+1, n_lanes)
    pad_rows = (-packed.shape[0]) % 8                        # whole sublanes
    if pad_rows:
        packed = jnp.pad(packed, ((0, pad_rows), (0, 0)))

    vspec = pl.BlockSpec(memory_space=pltpu.MemorySpace.VMEM)
    cost = pl.CostEstimate(
        flops=8 * S * n_lanes,
        transcendentals=S,
        bytes_accessed=(packed.shape[0] + S) * n_lanes * 4,
    )
    out_wide = pl.pallas_call(
        functools.partial(orbital_block_kernel, n_seq=S, n_valid=float(BO), eps=eps),
        out_shape=jax.ShapeDtypeStruct((S, n_lanes), jnp.float32),
        in_specs=[vspec],
        out_specs=vspec,
        cost_estimate=cost,
    )(packed)

    # (S, padded lanes) -> (B, S, O): drop padded lanes, wrapper-side layout plumbing.
    return out_wide[:, :BO].reshape(S, B, O).transpose(1, 0, 2)


def reference_forward(x_tokens, tgt_emb, pos_emb_s, w_do, gamma, beta, eps=1e-5):
    """Plain-JAX reference of the PyTorch forward (for a sanity check)."""
    x = jnp.where(x_tokens == -1, 0, x_tokens)
    h = tgt_emb[x] + pos_emb_s[None, :, :]
    y = jnp.einsum("bsd,do->bso", h, w_do)
    mean = jnp.mean(y, axis=(0, 2), keepdims=True)
    var = jnp.mean((y - mean) ** 2, axis=(0, 2), keepdims=True)
    y_hat = (y - mean) * jax.lax.rsqrt(var + eps)
    return y_hat * gamma.reshape(1, -1, 1) + beta.reshape(1, -1, 1)


if __name__ == "__main__":
    # Module config (num_in must equal num_out for PyTorch's BatchNorm1d to accept
    # the 3-D embedded tensor): num_in=4, n_hid=[], num_out=4, tgt_vocab_size=2,
    # d_model=12, use_embedding=True, batch_norm=True.
    B, S, V, D, O = 8, 4, 2, 12, 4

    key = jax.random.PRNGKey(0)
    k_x, k_tgt, k_pos, k_w, k_g, k_b = jax.random.split(key, 6)

    # occupation-style integer inputs in {-1, 0, 1}
    x_tokens = jax.random.randint(k_x, (B, S), minval=-1, maxval=2, dtype=jnp.int32)

    # deterministic parameter init (synthetic; matches PyTorch shapes)
    tgt_emb = jax.random.normal(k_tgt, (V, D), dtype=jnp.float32)        # nn.Embedding(2, 12)
    pos_emb_full = jax.random.normal(k_pos, (64, D), dtype=jnp.float32)  # nn.Embedding(64, 12)
    pos_emb_s = pos_emb_full[:S]                                         # positions 0..S-1
    bound = 1.0 / jnp.sqrt(jnp.float32(D))
    w_od = jax.random.uniform(k_w, (O, D), minval=-bound, maxval=bound,
                              dtype=jnp.float32)                         # nn.Linear(12, 4).weight
    w_do = w_od.T                                                        # pre-transpose for kernel
    gamma = 1.0 + 0.1 * jax.random.normal(k_g, (O,), dtype=jnp.float32)  # BN weight
    beta = 0.1 * jax.random.normal(k_b, (O,), dtype=jnp.float32)         # BN bias

    out = orbital_block(x_tokens, tgt_emb, pos_emb_s, w_do, gamma, beta)
    out = jax.block_until_ready(out)

    ref = reference_forward(x_tokens, tgt_emb, pos_emb_s, w_do, gamma, beta)
    assert out.shape == (B, S, O)
    assert jnp.allclose(out, ref, atol=1e-4, rtol=1e-4), "mismatch vs JAX reference"

    print("KERNEL_OK")
</pallas_src>

<mosaic_0001>
module attributes {stable_mosaic.version = 11 : i64} {
  func.func @orbital_block_kernel(%arg0: memref<24x128xf32, #tpu.memory_space<vmem>>, %arg1: memref<4x128xf32, #tpu.memory_space<vmem>>) attributes {dimension_semantics = [], scalar_prefetch = 0 : i64, scratch_operands = 0 : i64, tpu.core_type = #tpu.core_type<tc>} {
    %c0 = arith.constant 0 : index
    %c0_0 = arith.constant 0 : index
    %0 = vector.load %arg0[%c0, %c0_0] : memref<24x128xf32, #tpu.memory_space<vmem>>, vector<4x128xf32>
    %c4 = arith.constant 4 : index
    %c0_1 = arith.constant 0 : index
    %1 = vector.load %arg0[%c4, %c0_1] : memref<24x128xf32, #tpu.memory_space<vmem>>, vector<1x128xf32>
    %c5 = arith.constant 5 : index
    %c0_2 = arith.constant 0 : index
    %2 = vector.load %arg0[%c5, %c0_2] : memref<24x128xf32, #tpu.memory_space<vmem>>, vector<4x128xf32>
    %c9 = arith.constant 9 : index
    %c0_3 = arith.constant 0 : index
    %3 = vector.load %arg0[%c9, %c0_3] : memref<24x128xf32, #tpu.memory_space<vmem>>, vector<4x128xf32>
    %4 = vector.extract_strided_slice %3 {offsets = [0, 0], sizes = [4, 1], strides = [1, 1]} : vector<4x128xf32> to vector<4x1xf32>
    %c13 = arith.constant 13 : index
    %c0_4 = arith.constant 0 : index
    %5 = vector.load %arg0[%c13, %c0_4] : memref<24x128xf32, #tpu.memory_space<vmem>>, vector<4x128xf32>
    %6 = vector.extract_strided_slice %5 {offsets = [0, 0], sizes = [4, 1], strides = [1, 1]} : vector<4x128xf32> to vector<4x1xf32>
    %7 = vector.broadcast %1 : vector<1x128xf32> to vector<4x128xf32>
    %8 = arith.mulf %0, %7 : vector<4x128xf32>
    %9 = arith.addf %8, %2 : vector<4x128xf32>
    %cst = arith.constant dense<0.000000e+00> : vector<4xf32>
    %10 = vector.multi_reduction <add>, %9, %cst [1] : vector<4x128xf32> to vector<4xf32>
    %11 = vector.shape_cast %10 : vector<4xf32> to vector<4x1xf32>
    %12 = arith.mulf %9, %9 : vector<4x128xf32>
    %cst_5 = arith.constant dense<0.000000e+00> : vector<4xf32>
    %13 = vector.multi_reduction <add>, %12, %cst_5 [1] : vector<4x128xf32> to vector<4xf32>
    %14 = vector.shape_cast %13 : vector<4xf32> to vector<4x1xf32>
    %cst_6 = arith.constant 3.125000e-02 : f32
    %15 = vector.broadcast %cst_6 : f32 to vector<4x1xf32>
    %16 = arith.mulf %11, %15 : vector<4x1xf32>
    %cst_7 = arith.constant 3.125000e-02 : f32
    %17 = vector.broadcast %cst_7 : f32 to vector<4x1xf32>
    %18 = arith.mulf %14, %17 : vector<4x1xf32>
    %19 = arith.mulf %16, %16 : vector<4x1xf32>
    %20 = arith.subf %18, %19 : vector<4x1xf32>
    %cst_8 = arith.constant 9.99999974E-6 : f32
    %21 = vector.broadcast %cst_8 : f32 to vector<4x1xf32>
    %22 = arith.addf %20, %21 : vector<4x1xf32>
    %23 = math.rsqrt %22 : vector<4x1xf32>
    %24 = arith.mulf %4, %23 : vector<4x1xf32>
    %25 = arith.mulf %16, %24 : vector<4x1xf32>
    %26 = arith.subf %6, %25 : vector<4x1xf32>
    %27 = vector.broadcast %24 : vector<4x1xf32> to vector<4x128xf32>
    %28 = arith.mulf %9, %27 : vector<4x128xf32>
    %29 = vector.broadcast %26 : vector<4x1xf32> to vector<4x128xf32>
    %30 = arith.addf %28, %29 : vector<4x128xf32>
    %c0_9 = arith.constant 0 : index
    %c0_10 = arith.constant 0 : index
    %31 = vector.load %arg1[%c0_9, %c0_10] : memref<4x128xf32, #tpu.memory_space<vmem>>, vector<4x128xf32>
    tpu.vector_store %arg1[%c0_9, %c0_10], %30 {strides = array<i32>} : memref<4x128xf32, #tpu.memory_space<vmem>>, vector<4x128xf32>,
    return
  }
}

</mosaic_0001>

<bundles_post_ra>
// kernel: tpu_custom_call.1
= control target key start
LH: loop header
LB: loop body
LE: loop exit
PB: predicated region body
PF: predicated region fallthrough
CT: control target
= control target key end

     0   :  { %6 = vsyncpa [#allocation3], 0  ;;  %s176_s0 = inlined_call_operand.hbm [shape: f32[24,128], index: 0, kind: input, shape index: {}]   ;;  %s177_s1 = inlined_call_operand.hbm [shape: f32[4,128], index: 1, kind: output, shape index: {}]  }
   0x1   :  { %7 = vsyncpa [#allocation4], 0  ;;  %s137_s6 = smov [#allocation2]   ;;  %s89_s10 = scalar_lea.hbm %s176_s0, 384 }
   0x2   :  { %s13_s7 = sshll.u32 %s137_s6, 4  ;;  %p90_p0 = scmp.ne.s32.totalorder %s176_s0, %s89_s10  ;;  %s14_s7 = int_to_ptr.vmem [resolvable:$true] %s13_s7 }
   0x3   :  { %p93_p1 = scmp.lt.u32.totalorder %s89_s10, %s176_s0 }
   0x5   :  { %p95_p2 = pnand %p93_p1, %p90_p0 }
   0x7   :  { %98 = shalt.err (!%p95_p2)
}
   0x8   :  { %s99_s15 = scalar_lea.vmem %s14_s7, 384  ;;  %p104_p4 = scmp.lt.s32.totalorder %s14_s7, %s14_s7 }
   0x9   :  { %p100_p3 = scmp.ne.s32.totalorder %s14_s7, %s99_s15  ;;  %p105_p5 = scmp.lt.s32.totalorder %s99_s15, %s99_s15 }
   0xb   :  { %p106_p6 = por %p105_p5, %p104_p4 }
   0xd   :  { %p107_p7 = pnand %p106_p6, %p100_p3 }
   0xf   :  { %110 = shalt.err (!%p107_p7)
}
  0x10   :  { %s138_s16 = smov 128   ;;  %s139_s17 = smov 8  }
  0x11   :  { %19 = dma.hbm_to_vmem [thread:$0]  %s176_s0, 384, %s14_s7, [#allocation3], %s138_s16, %s138_s16, %s139_s17  }
  0x12   :  { %133 = dma.done.wait [#allocation3], 384  }
  0x13   :  { %134 = vsyncadd [#allocation3], 4294966912  ;;  %v23_v0 = vld [vmem:[#allocation2] sm:$0xf]  ;;  %v79_v1 = vld [vmem:[#allocation2 + $0x4] ss:$0 sm:$0xff] }
  0x14   :  { %v25_v2 = vld [vmem:[#allocation2 + $0x5] sm:$0xf]  ;;  %v32_v3 = vmul.f32 %v79_v1, %v23_v0  ;;  %vm34_vm0 = vcmask 1043456   ;;  %v140_v8 = vmov 0   ;;  %v26_v16 = vld [vmem:[#allocation2 + $0x9] sm:$0xf] }
  0x15   :  { %85 = vset.pattern.permute.xlu1 %v140_v8  ;;  %86 = vset.pattern.permute.xlu0 %v140_v8  ;;  %v27_v19 = vld [vmem:[#allocation2 + $0xd] sm:$0xf]  ;;  %s141_s0 = smov [#allocation5]  }
  0x16   :  { %v33_v4 = vadd.f32 %v32_v3, %v25_v2  ;;  %s70_s20 = sshll.u32 %s141_s0, 4  ;;  %s71_s20 = int_to_ptr.vmem [resolvable:$true] %s70_s20 }
  0x17   :  { %s111_s21 = scalar_lea.vmem %s71_s20, 64  ;;  %p116_p9 = scmp.lt.s32.totalorder %s71_s20, %s71_s20 }
  0x18   :  { %v35_v5 = vsel %vm34_vm0, %v33_v4, 0.0  ;;  %v38_v6 = vmul.f32 %v33_v4, %v33_v4  ;;  %p112_p8 = scmp.ne.s32.totalorder %s71_s20, %s111_s21  ;;  %p117_p10 = scmp.lt.s32.totalorder %s111_s21, %s111_s21 }
  0x19   :  { %36 = vadd.xlane.f32.xlu0 %v35_v5 }
  0x1a   :  { %v39_v7 = vsel %vm34_vm0, %v38_v6, 0.0  ;;  %p118_p11 = por %p117_p10, %p116_p9 }
  0x1c   :  { %p119_p12 = pnand %p118_p11, %p112_p8 }
  0x1d   :  { %40 = vadd.xlane.f32.xlu0 %v39_v7 }
  0xa6   :  { %v37_v9 = vpop.xlane.xlu0 %36 }
  0xa7   :  { %v42_v10 = vmul.f32 0.03125, %v37_v9 }
  0xa9   :  { %v44_v12 = vmul.f32 %v42_v10, %v42_v10 }
  0xaa   :  { %v41_v11 = vpop.xlane.xlu0 %40 }
  0xab   :  { %v43_v13 = vmul.f32 0.03125, %v41_v11 }
  0xad   :  { %v45_v14 = vsub.f32 %v43_v13, %v44_v12 }
  0xaf   :  { %v46_v15 = vadd.f32 1e-05, %v45_v14 }
  0xb1   :  { %87 = vrsqrt.f32 %v46_v15 }
  0xbb   :  { %v88_v17 = vpop.eup %87 }
  0xbc   :  { %v48_v18 = vmul.f32 %v88_v17, %v26_v16 }
  0xbe   :  { %53 = vperm.xlu1 %85, %v48_v18   ;;  %v49_v20 = vmul.f32 %v48_v18, %v42_v10 }
  0xc0   :  { %v50_v21 = vsub.f32 %v27_v19, %v49_v20 }
  0xc2   :  { %59 = vperm.xlu1 %85, %v50_v21  }
 0x13d   :  { %v54_v22 = vpop.permute.xlu1 %53 }
 0x13e   :  { %v56_v23 = vmul.f32 %v54_v22, %v33_v4 }
 0x141   :  { %v60_v24 = vpop.permute.xlu1 %59 }
 0x142   :  { %v62_v25 = vadd.f32 %v60_v24, %v56_v23 }
 0x144   :  { %63 = vst [vmem:[#allocation5] sm:$0xf] %v62_v25 }
 0x145   :  { %122 = shalt.err (!%p119_p12)
}
 0x146   :  { %s123_s24 = scalar_lea.hbm %s177_s1, 64 }
 0x147   :  { %p124_p13 = scmp.ne.s32.totalorder %s177_s1, %s123_s24  ;;  %p127_p0 = scmp.lt.u32.totalorder %s123_s24, %s177_s1 }
 0x149   :  { %p129_p1 = pnand %p127_p0, %p124_p13 }
 0x14b   :  { %132 = shalt.err (!%p129_p1)
}
 0x14c   :  { %73 = dma.vmem_to_hbm [thread:$0]  %s71_s20, 64, %s177_s1, [#allocation4]  }
 0x14d   :  { %135 = dma.done.wait [#allocation4], 64  }
 0x14e   :  { %136 = vsyncadd [#allocation4], 4294967232 }
 0x14f   :  { %77 = vsyncpa [#allocation3], 1 }
 0x150   :  { %78 = vsyncpa [#allocation4], 1 }

</bundles_post_ra>
